<compile_context>
chip_gen: v7x
topology: tpu7x:2x2x1
jax: 0.10.0
libtpu: 0.0.40
codegen_flags: <defaults>
</compile_context>

<pallas_src>
import jax
import jax.numpy as jnp
from jax.experimental import pallas as pl
from jax.experimental.pallas import tpu as pltpu


def _round_up(v: int, m: int) -> int:
    return ((v + m - 1) // m) * m


def _cond_mean_kernel_single(x_ref, w_ref, b_ref, o_ref):
    """Single-pass tile of  mn = x @ W + b  (whole d_x resident).

    x_ref: (tm, d_x)    bf16   row tile of conditioning data
    w_ref: (d_x, m_pad) bf16   full stacked per-column mean weights
    b_ref: (1, m_pad)   f32    stacked per-column biases (lane padded)
    o_ref: (tm, m_pad)  f32    output tile
    """
    o_ref[...] = (jnp.dot(x_ref[...], w_ref[...],
                          preferred_element_type=jnp.float32)
                  + b_ref[...]).astype(o_ref.dtype)


def _cond_mean_kernel_ktiled(x_ref, w_ref, b_ref, o_ref, acc_ref):
    """One (row-tile, K-slab) step of  mn = x @ W + b.

    x_ref:   (tm, tk)    bf16  row tile of conditioning data
    w_ref:   (tk, m_pad) bf16  K-slab of the stacked per-column mean weights
    b_ref:   (1, m_pad)  f32   stacked per-column biases (lane padded)
    o_ref:   (tm, m_pad) f32   output tile (written once, on the last K step)
    acc_ref: (tm, m_pad) f32   VMEM accumulator, persistent across K steps
    """
    k = pl.program_id(1)

    @pl.when(k == 0)
    def _():
        acc_ref[...] = jnp.zeros_like(acc_ref)

    # MXU matmul with f32 accumulation; the concatenation over the M column
    # distributions is realized by writing the full (lane-dense) output tile.
    acc_ref[...] += jnp.dot(x_ref[...], w_ref[...],
                            preferred_element_type=jnp.float32)

    @pl.when(k == pl.num_programs(1) - 1)
    def _():
        o_ref[...] = (acc_ref[...] + b_ref[...]).astype(o_ref.dtype)


def cond_matrix_product_forward(x, W, b, *, tm: int = 512):
    """Pallas implementation of CondMatrixProductDistribution.forward.

    Args:
        x: (n_rows, d_x) conditioning data (any float dtype; cast to bf16).
        W: (d_x, M) stacked per-column mean weights (column j -> dists[j]).
        b: (M,) stacked per-column mean biases (kept in f32).
        tm: requested row-tile size (sweepable; clamped to the problem and to
            the VMEM budget).

    Returns:
        mn: (n_rows, M) float32, mn[i, :] is the conditional mean given x[i, :].
    """
    n_rows, d_x = x.shape
    d_x_w, m = W.shape
    assert d_x_w == d_x and b.shape == (m,)

    # Lane-dense output: pad the column (distribution) axis up to a multiple
    # of 128 so stores are full unmasked vst (biggest measured lever for M<128).
    m_pad = _round_up(m, 128)

    # K (d_x) tiling: keep the stacked weight fully resident while the bf16
    # slab is small (<= 8 MiB); otherwise tile d_x in multiples of 128 so the
    # double-buffered weight stays bounded even on v7x's 64 MiB VMEM.
    if d_x * m_pad * 2 <= (8 << 20):
        tk = d_x
        nk = 1
        d_x_pad = d_x
    else:
        tk = 512
        d_x_pad = _round_up(d_x, tk)
        nk = d_x_pad // tk

    # Row tiling: large tiles amortize grid overhead and keep the (mem-bound)
    # kernel near the HBM roofline.  Clamp to the padded row count for small
    # problems; keep a multiple of 16 for bf16 sublane packing.
    tm_eff = min(max(tm, 16), _round_up(n_rows, 16))
    tm_eff = _round_up(tm_eff, 16)

    # Double-buffered x / W / bias / out blocks plus the f32 accumulator
    # (accumulator only on the K-tiled path, but count it conservatively).
    def _footprint(tm_, tk_):
        return (2 * (tm_ * tk_ * 2 + tk_ * m_pad * 2 + tm_ * m_pad * 4
                     + m_pad * 4)
                + tm_ * m_pad * 4)

    # Shrink the row tile if the working set would blow a conservative budget
    # (leaves headroom under v7x's 64 MiB physical VMEM).
    while _footprint(tm_eff, tk) > (40 << 20) and tm_eff > 128:
        tm_eff = _round_up(tm_eff // 2, 16)

    rows_pad = _round_up(n_rows, tm_eff)

    # Pad + cast inputs.  bf16 halves x/W HBM traffic and matches native MXU
    # input precision on v5e/v6e/v7x; zero padding is exact for the matmul.
    x_p = x.astype(jnp.bfloat16)
    if rows_pad != n_rows or d_x_pad != d_x:
        x_p = jnp.pad(x_p, ((0, rows_pad - n_rows), (0, d_x_pad - d_x)))
    w_p = W.astype(jnp.bfloat16)
    if d_x_pad != d_x or m_pad != m:
        w_p = jnp.pad(w_p, ((0, d_x_pad - d_x), (0, m_pad - m)))
    b_p = jnp.pad(b.astype(jnp.float32), (0, m_pad - m)).reshape(1, m_pad)

    vmem_limit = max(16 << 20,
                     min(int(_footprint(tm_eff, tk) * 1.5) + (4 << 20),
                         48 << 20))

    if nk == 1:
        # Fast path: full d_x resident, 1-D row grid, output written directly
        # (no accumulator round trip through VMEM).
        out = pl.pallas_call(
            _cond_mean_kernel_single,
            out_shape=jax.ShapeDtypeStruct((rows_pad, m_pad), jnp.float32),
            grid_spec=pltpu.PrefetchScalarGridSpec(
                num_scalar_prefetch=0,
                grid=(rows_pad // tm_eff,),
                in_specs=[
                    # row tile of conditioning data
                    pl.BlockSpec((tm_eff, d_x), lambda i: (i, 0)),
                    # full stacked per-column mean weights (resident)
                    pl.BlockSpec((d_x, m_pad), lambda i: (0, 0)),
                    # stacked per-column biases (tiny, lane padded)
                    pl.BlockSpec((1, m_pad), lambda i: (0, 0)),
                ],
                out_specs=pl.BlockSpec((tm_eff, m_pad), lambda i: (i, 0)),
            ),
            compiler_params=pltpu.CompilerParams(
                dimension_semantics=("parallel",),
                vmem_limit_bytes=vmem_limit,
            ),
        )(x_p, w_p, b_p)
    else:
        out = pl.pallas_call(
            _cond_mean_kernel_ktiled,
            out_shape=jax.ShapeDtypeStruct((rows_pad, m_pad), jnp.float32),
            grid_spec=pltpu.PrefetchScalarGridSpec(
                num_scalar_prefetch=0,
                grid=(rows_pad // tm_eff, nk),
                in_specs=[
                    # row tile of conditioning data, K-slab k
                    pl.BlockSpec((tm_eff, tk), lambda i, k: (i, k)),
                    # K-slab of the stacked per-column mean weights
                    pl.BlockSpec((tk, m_pad), lambda i, k: (k, 0)),
                    # stacked per-column biases (tiny, lane padded)
                    pl.BlockSpec((1, m_pad), lambda i, k: (0, 0)),
                ],
                out_specs=pl.BlockSpec((tm_eff, m_pad), lambda i, k: (i, 0)),
                scratch_shapes=[pltpu.VMEM((tm_eff, m_pad), jnp.float32)],
            ),
            compiler_params=pltpu.CompilerParams(
                dimension_semantics=("parallel", "arbitrary"),
                vmem_limit_bytes=vmem_limit,
            ),
        )(x_p, w_p, b_p)

    # Strip the lane/row padding introduced for alignment.
    return out[:n_rows, :m]


if __name__ == "__main__":
    # Small shapes consistent with the module: N rows of conditioning data,
    # d_x features each, M column distributions.
    # (Note: at shapes this tiny plain XLA would be just as good — the Pallas
    # path pays off once n_rows is in the thousands.)
    n_rows, d_x, n_cols = 16, 8, 4

    key = jax.random.PRNGKey(0)
    kx, kw, kb = jax.random.split(key, 3)

    # Conditioning data (what each row of W is conditioned on).
    x = jax.random.normal(kx, (n_rows, d_x), dtype=jnp.float32)

    # Deterministic per-column-distribution parameters:
    # dists[j] has mean weight w_j (d_x,) and bias b_j (scalar).
    per_col_w = jax.random.normal(kw, (n_cols, d_x), dtype=jnp.float32) * 0.1
    per_col_b = jax.random.normal(kb, (n_cols,), dtype=jnp.float32) * 0.01
    W = per_col_w.T                    # (d_x, M)
    b = per_col_b                      # (M,)

    mn = cond_matrix_product_forward(x, W, b)
    mn = jax.block_until_ready(mn)

    # Reference: torch.cat([d_j(x) for j], dim=1) == x @ W + b, computed with
    # the same bf16 input rounding the kernel uses (f32 accumulation).
    xf = x.astype(jnp.bfloat16).astype(jnp.float32)
    wf = W.astype(jnp.bfloat16).astype(jnp.float32)
    ref = jnp.dot(xf, wf, precision=jax.lax.Precision.HIGHEST) + b[None, :]

    assert mn.shape == (n_rows, n_cols)
    assert mn.dtype == jnp.float32
    assert jnp.allclose(mn, ref, atol=1e-4, rtol=1e-4)

    print("KERNEL_OK")
</pallas_src>

<mosaic_0001>
module attributes {stable_mosaic.version = 11 : i64} {
  func.func @_cond_mean_kernel_single(%arg0: i32, %arg1: memref<16x8xbf16, #tpu.memory_space<vmem>>, %arg2: memref<8x128xbf16, #tpu.memory_space<vmem>>, %arg3: memref<1x128xf32, #tpu.memory_space<vmem>>, %arg4: memref<16x128xf32, #tpu.memory_space<vmem>>) attributes {dimension_semantics = [#tpu.dimension_semantics<parallel>], iteration_bounds = array<i64: 1>, scalar_prefetch = 0 : i64, scratch_operands = 0 : i64, tpu.core_type = #tpu.core_type<tc>, window_params = [{transform_indices = @transform_0, window_bounds = array<i64: 16, 8>}, {pipeline_mode = #tpu.pipeline_mode<synchronous>, transform_indices = @transform_1, window_bounds = array<i64: 8, 128>}, {pipeline_mode = #tpu.pipeline_mode<synchronous>, transform_indices = @transform_2, window_bounds = array<i64: 1, 128>}, {transform_indices = @transform_3, window_bounds = array<i64: 16, 128>}]} {
    %c0 = arith.constant 0 : index
    %c0_0 = arith.constant 0 : index
    %0 = vector.load %arg1[%c0, %c0_0] : memref<16x8xbf16, #tpu.memory_space<vmem>>, vector<16x8xbf16>
    %c0_1 = arith.constant 0 : index
    %c0_2 = arith.constant 0 : index
    %1 = vector.load %arg2[%c0_1, %c0_2] : memref<8x128xbf16, #tpu.memory_space<vmem>>, vector<8x128xbf16>
    %cst = arith.constant dense<0.000000e+00> : vector<16x128xf32>
    %2 = tpu.matmul %0, %1, %cst {dimension_numbers = #tpu.dot_dimension_numbers<[1], [0], [0], [1], [0, 0, 1, 1], [], []>} : vector<16x8xbf16>, vector<8x128xbf16>, vector<16x128xf32> -> vector<16x128xf32>
    %c0_3 = arith.constant 0 : index
    %c0_4 = arith.constant 0 : index
    %3 = vector.load %arg3[%c0_3, %c0_4] : memref<1x128xf32, #tpu.memory_space<vmem>>, vector<1x128xf32>
    %4 = vector.broadcast %3 : vector<1x128xf32> to vector<16x128xf32>
    %5 = arith.addf %2, %4 : vector<16x128xf32>
    %c0_5 = arith.constant 0 : index
    %c0_6 = arith.constant 0 : index
    %6 = vector.load %arg4[%c0_5, %c0_6] : memref<16x128xf32, #tpu.memory_space<vmem>>, vector<16x128xf32>
    tpu.vector_store %arg4[%c0_5, %c0_6], %5 {strides = array<i32>} : memref<16x128xf32, #tpu.memory_space<vmem>>, vector<16x128xf32>,
    return
  }
  func.func @transform_0(%arg0: i32) -> (i32, i32) {
    %c0_i32 = arith.constant 0 : i32
    %c0_i32_0 = arith.constant 0 : i32
    return %arg0, %c0_i32 : i32, i32
  }
  func.func @transform_1(%arg0: i32) -> (i32, i32) {
    %c0_i32 = arith.constant 0 : i32
    %c0_i32_0 = arith.constant 0 : i32
    %c0_i32_1 = arith.constant 0 : i32
    return %c0_i32, %c0_i32_0 : i32, i32
  }
  func.func @transform_2(%arg0: i32) -> (i32, i32) {
    %c0_i32 = arith.constant 0 : i32
    %c0_i32_0 = arith.constant 0 : i32
    %c0_i32_1 = arith.constant 0 : i32
    return %c0_i32, %c0_i32_0 : i32, i32
  }
  func.func @transform_3(%arg0: i32) -> (i32, i32) {
    %c0_i32 = arith.constant 0 : i32
    %c0_i32_0 = arith.constant 0 : i32
    return %arg0, %c0_i32 : i32, i32
  }
}

</mosaic_0001>

<bundles_post_ra>
// kernel: tpu_custom_call.1
= control target key start
LH: loop header
LB: loop body
LE: loop exit
PB: predicated region body
PF: predicated region fallthrough
CT: control target
= control target key end

     0   :  { %vm35_vm0 = vcmask 1043456   ;;  %v139_v1 = vmov 0.0   ;;  %vm140_vm1 = vmmov 0   ;;  %vm31_vm2 = vcmask 64512   ;;  %s185_s0 = inlined_call_operand.vmem [shape: bf16[16,8], index: 0, kind: input, shape index: {}]   ;;  %s186_s1 = inlined_call_operand.vmem [shape: bf16[8,128], index: 1, kind: input, shape index: {}]   ;;  %s187_s2 = inlined_call_operand.vmem [shape: f32[1,128], index: 2, kind: input, shape index: {}]   ;;  %s188_s3 = inlined_call_operand.hbm [shape: f32[16,128], index: 3, kind: output, shape index: {}]  }
   0x1   :  { %v18_v0 = vld [vmem:[%s186_s1] sm:$0xf]  ;;  %103 = vmatprep.subr.bf16.mxu0 %v139_v1  ;;  %105 = vmatprep.mubr.msk.bf16.mxu0 %vm140_vm1, %v139_v1 }
   0x2   :  { %v37_v2 = vsel %vm35_vm0, %v18_v0, 0  ;;  %v114_v3 = vld [vmem:[%s185_s0] sm:$0xff]  }
   0x3   :  { %104 = vmatpush3.bf16.msra.mxu0 %v37_v2 }
   0x4   :  { %8 = vsyncpa [#allocation3], 0  ;;  %v98_v4 = vld [vmem:[%s187_s2] ss:$0 sm:$0xff]  ;;  %s141_s18 = smov [#allocation2]  }
   0x5   :  { %s87_s1 = sshll.u32 %s141_s18, 4  ;;  %s88_s1 = int_to_ptr.vmem [resolvable:$true] %s87_s1 }
   0x6   :  { %106 = vmatmul.mubr.msk.bf16.vlgmr.msra.gmra.mrb[0].mxu0 %vm31_vm2, %v114_v3  ;;  %s115_s0 = scalar_lea.vmem %s88_s1, 256  ;;  %p120_p1 = scmp.lt.s32.totalorder %s88_s1, %s88_s1 }
   0x7   :  { %p116_p0 = scmp.ne.s32.totalorder %s88_s1, %s115_s0  ;;  %p121_p2 = scmp.lt.s32.totalorder %s115_s0, %s115_s0 }
   0x9   :  { %p122_p3 = por %p121_p2, %p120_p1 }
   0xb   :  { %p123_p4 = pnand %p122_p3, %p116_p0 }
  0xd9   :  { %v73_v5 = vpop.f32.mrb[0].mxu0 }
  0xda   :  { %v74_v6 = vadd.f32 %v98_v4, %v73_v5  ;;  %v107_v7 = vpop.f32.mrb[1].mxu0 }
  0xdb   :  { %v76_v8 = vpop.f32.mrb[2].mxu0 }
  0xdc   :  { %80 = vst [vmem:[#allocation2] sm:$0xff] %v74_v6  ;;  %v77_v9 = vadd.f32 %v98_v4, %v76_v8  ;;  %v108_v10 = vpop.f32.mrb[3].mxu0 }
  0xde   :  { %81 = vst [vmem:[#allocation2 + $0x8] sm:$0xff] %v77_v9 }
  0xdf   :  { %126 = shalt.err (!%p123_p4)
}
  0xe0   :  { %s127_s20 = scalar_lea.hbm %s188_s3, 256 }
  0xe1   :  { %p128_p5 = scmp.ne.s32.totalorder %s188_s3, %s127_s20  ;;  %p131_p6 = scmp.lt.u32.totalorder %s127_s20, %s188_s3 }
  0xe3   :  { %p133_p7 = pnand %p131_p6, %p128_p5 }
  0xe5   :  { %136 = shalt.err (!%p133_p7)
}
  0xe6   :  { %s142_s25 = smov 128   ;;  %s143_s26 = smov 8  }
  0xe7   :  { %93 = dma.vmem_to_hbm [thread:$0]  %s88_s1, 256, %s188_s3, [#allocation3], %s142_s25, %s142_s25, %s143_s26  }
  0xe8   :  { %137 = dma.done.wait [#allocation3], 256  }
  0xe9   :  { %138 = vsyncadd [#allocation3], 4294967040 }
  0xea   :  { %97 = vsyncpa [#allocation3], 1 }

</bundles_post_ra>
